<compile_context>
chip_gen: v6e
topology: v6e:2x2x1
jax: 0.10.0
libtpu: 0.0.40
codegen_flags: <defaults>
</compile_context>

<pallas_src>
import jax
import jax.numpy as jnp
from jax.experimental import pallas as pl
from jax.experimental.pallas import tpu as pltpu

BN_EPS = 1e-5


def mlp_half_kernel(x_ref, w_ref, gamma_ref, beta_ref, o_ref, acc_ref):
    """Grid = (C_out tiles [parallel], K tiles [arbitrary reduction])."""
    k = pl.program_id(1)

    @pl.when(k == 0)
    def _():
        acc_ref[...] = jnp.zeros_like(acc_ref)

    # bf16 x bf16 matmul on the MXU, f32 accumulation in VMEM scratch.
    acc_ref[...] += jnp.dot(
        x_ref[...], w_ref[...], preferred_element_type=jnp.float32
    )

    @pl.when(k == pl.num_programs(1) - 1)
    def _():
        y = acc_ref[...]                                      # [N, TILE_COUT] f32
        inv_n = 1.0 / y.shape[0]
        mean = jnp.sum(y, axis=0, keepdims=True) * inv_n      # [1, TILE_COUT]
        diff = y - mean
        var = jnp.sum(diff * diff, axis=0, keepdims=True) * inv_n
        # Fold BN into a single per-feature scale/shift FMA.
        scale = gamma_ref[...] * jax.lax.rsqrt(var + BN_EPS)  # rsqrt -> EUP
        shift = beta_ref[...] - mean * scale
        o_ref[...] = jnp.maximum(y * scale + shift, 0.0).astype(o_ref.dtype)


def _pick_tile(dim, preferred=(512, 256, 128)):
    for t in preferred:
        if dim % t == 0:
            return t
    return dim  # small / odd dims: use the whole axis (block == full extent)


def mlp_half_forward(x, w_t, gamma, beta, *, tile_cout=None, tile_k=None):
    """x: [N, C_in] (bf16); w_t: [C_in, C_out] pre-transposed (bf16);
    gamma/beta: [C_out] f32.  Returns [N, C_out] in x.dtype."""
    n, c_in = x.shape
    c_in_w, c_out = w_t.shape
    assert c_in == c_in_w

    tile_cout = _pick_tile(c_out) if tile_cout is None else tile_cout
    tile_k = _pick_tile(c_in) if tile_k is None else tile_k
    assert c_out % tile_cout == 0 and c_in % tile_k == 0

    g2 = gamma.reshape(1, c_out).astype(jnp.float32)
    b2 = beta.reshape(1, c_out).astype(jnp.float32)

    grid = (c_out // tile_cout, c_in // tile_k)

    return pl.pallas_call(
        mlp_half_kernel,
        out_shape=jax.ShapeDtypeStruct((n, c_out), x.dtype),
        grid_spec=pltpu.PrefetchScalarGridSpec(
            num_scalar_prefetch=0,
            grid=grid,
            in_specs=[
                pl.BlockSpec((n, tile_k), lambda j, k: (0, k)),        # x
                pl.BlockSpec((tile_k, tile_cout), lambda j, k: (k, j)),  # w_t
                pl.BlockSpec((1, tile_cout), lambda j, k: (0, j)),     # gamma
                pl.BlockSpec((1, tile_cout), lambda j, k: (0, j)),     # beta
            ],
            out_specs=pl.BlockSpec((n, tile_cout), lambda j, k: (0, j)),
            scratch_shapes=[pltpu.VMEM((n, tile_cout), jnp.float32)],
        ),
        compiler_params=pltpu.CompilerParams(
            dimension_semantics=("parallel", "arbitrary")
        ),
    )(x, w_t, g2, b2)


def reference_forward(x, weight, bias, gamma, beta):
    """Pure-JAX reference with the same bf16 inputs; math in f32."""
    xf = x.astype(jnp.float32)
    wf = weight.astype(jnp.float32)
    y = xf @ wf.T + bias                      # bias cancels under BN below
    mean = jnp.mean(y, axis=0, keepdims=True)
    var = jnp.mean((y - mean) ** 2, axis=0, keepdims=True)
    y = (y - mean) * jax.lax.rsqrt(var + BN_EPS) * gamma + beta
    return jnp.maximum(y, 0.0)


if __name__ == "__main__":
    # Small shapes consistent with MLP_Half(channel=256, res_expansion=1.0)
    batch = 8
    channel = 256
    c_out = int(channel * 1.0)

    key = jax.random.PRNGKey(0)
    kx, kw, kb = jax.random.split(key, 3)

    x = jax.random.normal(kx, (batch, channel), jnp.float32).astype(jnp.bfloat16)

    # nn.Linear-style init; BatchNorm1d gamma=1, beta=0.
    bound = 1.0 / (channel ** 0.5)
    weight = jax.random.uniform(kw, (c_out, channel), jnp.float32, -bound, bound)
    bias = jax.random.uniform(kb, (c_out,), jnp.float32, -bound, bound)
    gamma = jnp.ones((c_out,), jnp.float32)
    beta = jnp.zeros((c_out,), jnp.float32)

    # --- parameter prep (done once, outside the forward path) ---
    w_bf16 = weight.astype(jnp.bfloat16)
    w_t = jnp.asarray(w_bf16.T)   # [C_in, C_out], stored pre-transposed
    # Linear bias intentionally NOT passed to the kernel: training-mode
    # BatchNorm's mean subtraction cancels it exactly.

    # Force tile 128 so the test exercises the multi-tile grid (2 x 2).
    out = mlp_half_forward(x, w_t, gamma, beta, tile_cout=128, tile_k=128)
    out = jax.block_until_ready(out)

    ref = reference_forward(x, w_bf16, bias, gamma, beta)
    assert out.shape == (batch, c_out)
    assert jnp.allclose(out.astype(jnp.float32), ref, atol=3e-2, rtol=3e-2), (
        "mismatch vs reference"
    )

    print("KERNEL_OK")
</pallas_src>

<mosaic_0001>
module attributes {stable_mosaic.version = 11 : i64} {
  func.func @mlp_half_kernel(%arg0: i32, %arg1: i32, %arg2: memref<8x128xbf16, #tpu.memory_space<vmem>>, %arg3: memref<128x128xbf16, #tpu.memory_space<vmem>>, %arg4: memref<1x128xf32, #tpu.memory_space<vmem>>, %arg5: memref<1x128xf32, #tpu.memory_space<vmem>>, %arg6: memref<8x128xbf16, #tpu.memory_space<vmem>>, %arg7: memref<8x128xf32, #tpu.memory_space<vmem>>) attributes {dimension_semantics = [#tpu.dimension_semantics<parallel>, #tpu.dimension_semantics<arbitrary>], iteration_bounds = array<i64: 2, 2>, scalar_prefetch = 0 : i64, scratch_operands = 1 : i64, tpu.core_type = #tpu.core_type<tc>, window_params = [{transform_indices = @transform_0, window_bounds = array<i64: 8, 128>}, {transform_indices = @transform_1, window_bounds = array<i64: 128, 128>}, {transform_indices = @transform_2, window_bounds = array<i64: 1, 128>}, {transform_indices = @transform_3, window_bounds = array<i64: 1, 128>}, {transform_indices = @transform_4, window_bounds = array<i64: 8, 128>}]} {
    %c0_i32 = arith.constant 0 : i32
    %0 = arith.cmpi eq, %arg1, %c0_i32 : i32
    %1 = arith.extui %0 : i1 to i32
    %c0_i32_0 = arith.constant 0 : i32
    %2 = arith.cmpi ne, %1, %c0_i32_0 : i32
    scf.if %2 {
      %cst_9 = arith.constant 0.000000e+00 : f32
      %12 = vector.broadcast %cst_9 : f32 to vector<8x128xf32>
      %c0_10 = arith.constant 0 : index
      %c0_11 = arith.constant 0 : index
      %13 = vector.load %arg7[%c0_10, %c0_11] : memref<8x128xf32, #tpu.memory_space<vmem>>, vector<8x128xf32>
      tpu.vector_store %arg7[%c0_10, %c0_11], %12 {strides = array<i32>} : memref<8x128xf32, #tpu.memory_space<vmem>>, vector<8x128xf32>,
    } else {
    }
    %c0 = arith.constant 0 : index
    %c0_1 = arith.constant 0 : index
    %3 = vector.load %arg7[%c0, %c0_1] : memref<8x128xf32, #tpu.memory_space<vmem>>, vector<8x128xf32>
    %c0_2 = arith.constant 0 : index
    %c0_3 = arith.constant 0 : index
    %4 = vector.load %arg2[%c0_2, %c0_3] : memref<8x128xbf16, #tpu.memory_space<vmem>>, vector<8x128xbf16>
    %c0_4 = arith.constant 0 : index
    %c0_5 = arith.constant 0 : index
    %5 = vector.load %arg3[%c0_4, %c0_5] : memref<128x128xbf16, #tpu.memory_space<vmem>>, vector<128x128xbf16>
    %cst = arith.constant dense<0.000000e+00> : vector<8x128xf32>
    %6 = tpu.matmul %4, %5, %cst {dimension_numbers = #tpu.dot_dimension_numbers<[1], [0], [0], [1], [0, 0, 1, 1], [], []>} : vector<8x128xbf16>, vector<128x128xbf16>, vector<8x128xf32> -> vector<8x128xf32>
    %7 = arith.addf %3, %6 : vector<8x128xf32>
    %c0_6 = arith.constant 0 : index
    %c0_7 = arith.constant 0 : index
    %8 = vector.load %arg7[%c0_6, %c0_7] : memref<8x128xf32, #tpu.memory_space<vmem>>, vector<8x128xf32>
    tpu.vector_store %arg7[%c0_6, %c0_7], %7 {strides = array<i32>} : memref<8x128xf32, #tpu.memory_space<vmem>>, vector<8x128xf32>,
    %c1_i32 = arith.constant 1 : i32
    %9 = arith.cmpi eq, %arg1, %c1_i32 : i32
    %10 = arith.extui %9 : i1 to i32
    %c0_i32_8 = arith.constant 0 : i32
    %11 = arith.cmpi ne, %10, %c0_i32_8 : i32
    scf.if %11 {
      %c0_9 = arith.constant 0 : index
      %c0_10 = arith.constant 0 : index
      %12 = vector.load %arg7[%c0_9, %c0_10] : memref<8x128xf32, #tpu.memory_space<vmem>>, vector<8x128xf32>
      %cst_11 = arith.constant dense<0.000000e+00> : vector<128xf32>
      %13 = vector.multi_reduction <add>, %12, %cst_11 [0] : vector<8x128xf32> to vector<128xf32>
      %14 = vector.shape_cast %13 : vector<128xf32> to vector<1x128xf32>
      %cst_12 = arith.constant 1.250000e-01 : f32
      %15 = vector.broadcast %cst_12 : f32 to vector<1x128xf32>
      %16 = arith.mulf %14, %15 : vector<1x128xf32>
      %17 = vector.broadcast %16 : vector<1x128xf32> to vector<8x128xf32>
      %18 = arith.subf %12, %17 : vector<8x128xf32>
      %19 = arith.mulf %18, %18 : vector<8x128xf32>
      %cst_13 = arith.constant dense<0.000000e+00> : vector<128xf32>
      %20 = vector.multi_reduction <add>, %19, %cst_13 [0] : vector<8x128xf32> to vector<128xf32>
      %21 = vector.shape_cast %20 : vector<128xf32> to vector<1x128xf32>
      %cst_14 = arith.constant 1.250000e-01 : f32
      %22 = vector.broadcast %cst_14 : f32 to vector<1x128xf32>
      %23 = arith.mulf %21, %22 : vector<1x128xf32>
      %c0_15 = arith.constant 0 : index
      %c0_16 = arith.constant 0 : index
      %24 = vector.load %arg4[%c0_15, %c0_16] : memref<1x128xf32, #tpu.memory_space<vmem>>, vector<1x128xf32>
      %cst_17 = arith.constant 9.99999974E-6 : f32
      %25 = vector.broadcast %cst_17 : f32 to vector<1x128xf32>
      %26 = arith.addf %23, %25 : vector<1x128xf32>
      %27 = math.rsqrt %26 : vector<1x128xf32>
      %28 = arith.mulf %24, %27 : vector<1x128xf32>
      %c0_18 = arith.constant 0 : index
      %c0_19 = arith.constant 0 : index
      %29 = vector.load %arg5[%c0_18, %c0_19] : memref<1x128xf32, #tpu.memory_space<vmem>>, vector<1x128xf32>
      %30 = arith.mulf %16, %28 : vector<1x128xf32>
      %31 = arith.subf %29, %30 : vector<1x128xf32>
      %32 = vector.broadcast %28 : vector<1x128xf32> to vector<8x128xf32>
      %33 = arith.mulf %12, %32 : vector<8x128xf32>
      %34 = vector.broadcast %31 : vector<1x128xf32> to vector<8x128xf32>
      %35 = arith.addf %33, %34 : vector<8x128xf32>
      %cst_20 = arith.constant 0.000000e+00 : f32
      %36 = vector.broadcast %cst_20 : f32 to vector<8x128xf32>
      %37 = arith.maximumf %35, %36 : vector<8x128xf32>
      %38 = arith.truncf %37 : vector<8x128xf32> to vector<8x128xbf16>
      %c0_21 = arith.constant 0 : index
      %c0_22 = arith.constant 0 : index
      %39 = vector.load %arg6[%c0_21, %c0_22] : memref<8x128xbf16, #tpu.memory_space<vmem>>, vector<8x128xbf16>
      tpu.vector_store %arg6[%c0_21, %c0_22], %38 {strides = array<i32>} : memref<8x128xbf16, #tpu.memory_space<vmem>>, vector<8x128xbf16>,
    } else {
    }
    return
  }
  func.func @transform_0(%arg0: i32, %arg1: i32) -> (i32, i32) {
    %c0_i32 = arith.constant 0 : i32
    %c0_i32_0 = arith.constant 0 : i32
    return %c0_i32, %arg1 : i32, i32
  }
  func.func @transform_1(%arg0: i32, %arg1: i32) -> (i32, i32) {
    %c0_i32 = arith.constant 0 : i32
    return %arg1, %arg0 : i32, i32
  }
  func.func @transform_2(%arg0: i32, %arg1: i32) -> (i32, i32) {
    %c0_i32 = arith.constant 0 : i32
    %c0_i32_0 = arith.constant 0 : i32
    return %c0_i32, %arg0 : i32, i32
  }
  func.func @transform_3(%arg0: i32, %arg1: i32) -> (i32, i32) {
    %c0_i32 = arith.constant 0 : i32
    %c0_i32_0 = arith.constant 0 : i32
    return %c0_i32, %arg0 : i32, i32
  }
  func.func @transform_4(%arg0: i32, %arg1: i32) -> (i32, i32) {
    %c0_i32 = arith.constant 0 : i32
    %c0_i32_0 = arith.constant 0 : i32
    return %c0_i32, %arg0 : i32, i32
  }
}

</mosaic_0001>

<bundles_post_ra>
// kernel: tpu_custom_call.1
= control target key start
LH: loop header
LB: loop body
LE: loop exit
PB: predicated region body
PF: predicated region fallthrough
CT: control target
= control target key end

     0   :  { %s1358_s0 = inlined_call_operand.hbm [shape: bf16[8,256], index: 0, kind: input, shape index: {}]   ;;  %s1359_s1 = inlined_call_operand.hbm [shape: bf16[256,256], index: 1, kind: input, shape index: {}]   ;;  %s1360_s2 = inlined_call_operand.vmem [shape: f32[1,256], index: 2, kind: input, shape index: {}]   ;;  %s1361_s3 = inlined_call_operand.vmem [shape: f32[1,256], index: 3, kind: input, shape index: {}]   ;;  %s1362_s4 = inlined_call_operand.hbm [shape: bf16[8,256], index: 4, kind: output, shape index: {}]  }
   0x1   :  { %1373 = sst [smem:[#allocation22_spill]] %s1358_s0 }
   0x2   :  { %9 = vsyncpa [#allocation4], 0 }
   0x3   :  { %11 = vsyncpa [#allocation4 + $0x1], 0 }
   0x4   :  { %12 = vsyncpa [#allocation7], 0 }
   0x5   :  { %14 = vsyncpa [#allocation7 + $0x1], 0 }
   0x6   :  { %15 = vsyncpa [#allocation5], 0 }
   0x7   :  { %17 = vsyncpa [#allocation5 + $0x1], 0  ;;  %s1040_s15 = smov 0   ;;  %s1042_s16 = smov 0  }
   0x8   :  { %s1044_s17 = smov 0   ;;  %s1046_s18 = smov 0  }
   0x9   :  { %s1048_s19 = smov 0   ;;  %s1050_s20 = smov 0  }
   0xa   :  { %s1052_s21 = smov 0   ;;  %s1054_s22 = smov 0  }
   0xb   :  { %s1056_s23 = smov 0   ;;  %s1058_s24 = smov 0  }
   0xc   :  { %s1060_s25 = smov 0   ;;  %s1062_s26 = smov 0  }
   0xd   :  { %s1064_s27 = smov 0   ;;  %s1066_s28 = smov 0  }
   0xe LB: > { %1374 = sst [smem:[#allocation12_spill]] %s952_s15  ;;  %s1363_s29 = sadd.s32 4294967295, %s1004_s28   ;;  %s1004_s28 = sphi %s1066_s28, %s23_s28   ;;  %s1000_s27 = sphi %s1064_s27, %s1419_s27   ;;  %s996_s26 = sphi %s1062_s26, %s1409_s26   ;;  %s992_s25 = sphi %s1060_s25, %s1418_s25   ;;  %s988_s24 = sphi %s1058_s24, %s1408_s24   ;;  %s984_s23 = sphi %s1056_s23, %s1407_s23   ;;  %s980_s22 = sphi %s1054_s22, %s1417_s22   ;;  %s976_s21 = sphi %s1052_s21, %s1416_s21   ;;  %s972_s20 = sphi %s1050_s20, %s1415_s20   ;;  %s968_s19 = sphi %s1048_s19, %s1414_s19   ;;  %s964_s18 = sphi %s1046_s18, %s1413_s18   ;;  %s960_s17 = sphi %s1044_s17, %s1404_s17   ;;  %s956_s16 = sphi %s1042_s16, %s1412_s16   ;;  %s952_s15 = sphi %s1040_s15, %s1411_s15  }
   0xf   : > { %1375 = sst [smem:[#allocation13_spill]] %s960_s17  ;;  %s32_s5 = sadd.s32 1, %s996_s26 }
  0x10   : > { %1376 = sst [smem:[#allocation14_spill]] %s984_s23  ;;  %s35_s6 = sadd.s32 1, %s1000_s27 }
  0x11   : > { %1377 = sst [smem:[#allocation15_spill]] %s996_s26  ;;  %p33_p0 = scmp.ge.s32.totalorder %s32_s5, 2 }
  0x12   : > { %s42_s7 = sadd.s32 1, %s984_s23  ;;  %p49_p1 = scmp.ne.s32.totalorder %s984_s23, %s980_s22 }
  0x13   : > { %p50_p2 = scmp.eq.s32.totalorder %s1004_s28, 0  ;;  %s1421_s5 = smov (%p33_p0, %s32_s5), 0 }
  0x14   : > { %1378 = sst [smem:[#allocation16_spill]] %s1421_s5  ;;  %s1423_s6 = smov (!%p33_p0, %s35_s6), %s1000_s27 }
  0x15   : > { %s39_s8 = ssub.s32 %s996_s26, %s1421_s5  ;;  %p1123_p3 = por %p50_p2, %p49_p1 }
  0x16   : > { %p37_p4 = scmp.ge.s32.totalorder %s1423_s6, 2  ;;  %p40_p5 = scmp.eq.s32.totalorder %s39_s8, 0 }
  0x17   : > { %p55_p6 = scmp.ne.s32.totalorder %s980_s22, %s976_s21  ;;  %p1130_p7 = scmp.eq.s32.totalorder %s1363_s29, 0 }
  0x18   : > { %s1425_s6 = smov (%p37_p4, %s1423_s6), 0  ;;  %s70_s21 = sadd.s32 1, %s972_s20 }
  0x19   : > { %1381 = sst [smem:[#allocation17_spill]] %s1425_s6  ;;  %p1141_p8 = por %p1130_p7, %p55_p6 }
  0x1a   : > { %s1137_s11 = scalar_select %p40_p5, %s984_s23, %s42_s7  }
  0x1b   : > { %s66_s13 = ssub.s32 %s1000_s27, %s1425_s6  ;;  %p77_p10 = scmp.ne.s32.totalorder %s972_s20, %s968_s19 }
  0x1c   : > { %1382 = sst [smem:[#allocation18_spill]] %s1137_s11  ;;  %s67_s14 = sor.u32 %s66_s13, %s39_s8 }
  0x1d   : > { %p68_p9 = scmp.eq.s32.totalorder %s67_s14, 0  ;;  %p83_p11 = scmp.ne.s32.totalorder %s968_s19, %s964_s18 }
  0x1e   : > { %p146_p12 = scmp.eq.s32.totalorder %s66_s13, 0  ;;  %p1157_p13 = por %p77_p10, %p50_p2 }
  0x1f   : > { %s1153_s7 = scalar_select %p68_p9, %s972_s20, %s70_s21  }
  0x20   : > { %p1163_p0 = por %p83_p11, %p1130_p7  ;;  %s148_s8 = sadd.s32 1, %s960_s17 }
  0x21   : > { %1384 = sst [smem:[#allocation19_spill]] %s1153_s7  ;;  %p158_p1 = scmp.ne.s32.totalorder %s960_s17, %s956_s16 }
  0x22   : > { %s1386_s29 = scalar_select %p1163_p0, 1, 0 }
  0x23   : > { %s1171_s14 = scalar_select %p146_p12, %s960_s17, %s148_s8  }
  0x24   : > { %s1388_s18 = sadd.s32 4294967295, %s1004_s28   ;;  %p164_p5 = scmp.ne.s32.totalorder %s956_s16, %s952_s15 }
  0x25   : > { %1387 = sst [smem:[#allocation20_spill]] %s1171_s14  ;;  %p159_p4 = scmp.eq.s32.totalorder %s1388_s18, 3 }
  0x26   : > { %s1389_s13 = sadd.s32 4294967294, %s1004_s28   ;;  %p670_p7 = scmp.lt.s32.totalorder %s1004_s28, 4 }
  0x27   : > { %p165_p2 = scmp.eq.s32.totalorder %s1389_s13, 3  ;;  %p1179_p6 = por %p159_p4, %p158_p1 }
  0x28   : > { %s185_s6 = sand.u32 1, %s984_s23   ;;  %s600_s8 = sshll.u32 %s996_s26, 6 }
  0x29   : > { %s1390_s21 = scalar_select %p1179_p6, 1, 0 }
  0x2a   : > { %p1184_p9 = por %p165_p2, %p164_p5  ;;  %s599_s5 = sshll.u32 %s185_s6, 2 }
  0x2b   : > { %s1393_s0 = sld [smem:[#allocation22_spill]]  ;;  %s189_s14 = scalar_lea.vmem [#allocation3], %s599_s5 }
  0x2c   : > { %s1391_s10 = scalar_select %p1184_p9, 1, 0 }
  0x2d   : > { %s196_s17 = sshll.u32 %s189_s14, 4  ;;  %p1195_p10 = pnand %p670_p7, %p1123_p3  ;;  %s197_s17 = int_to_ptr.vmem [resolvable:$true] %s196_s17 }
  0x2e   : > { %1392 = sst [smem:[#allocation21_spill]] %s1391_s10  ;;  %s623_s15 = sshll.u32 %s996_s26, 5 }
  0x2f   : > { %p1202_p11 = pnand %p670_p7, %p1157_p13  ;;  %p605_p12 = scmp.ge.s32.totalorder %s1004_s28, 1 }
  0x30   : > { %s186_s23 = scalar_lea.sflag [#allocation4], %s185_s6  ;;  %p802_p1 = pneg %p1195_p10 }
  0x31   : > { %s194_s18 = scalar_lea.hbm %s1393_s0, %s600_s8  ;;  %s813_s11 = scalar_lea.vmem %s197_s17, 64 }
  0x32   : > { %p814_p4 = scmp.ne.s32.totalorder %s197_s17, %s813_s11  ;;  %s1006_s5 = smov [#allocation3]  }
  0x33   : > { %s818_s9 = sshll.u32 %s1006_s5, 4  ;;  %s819_s9 = int_to_ptr.vmem [resolvable:$false] %s818_s9 }
  0x34   : > { %p816_p5 = pnand %p814_p4, %p802_p1  ;;  %s820_s7 = scalar_lea.vmem %s819_s9, 128 }
  0x35   : > { %p821_p3 = scmp.lt.s32.totalorder %s197_s17, %s819_s9  ;;  %p822_p9 = scmp.lt.s32.totalorder %s820_s7, %s813_s11 }
  0x36   : > { %p817_p2 = pneg %p816_p5 }
  0x37   : > { %p823_p6 = por %p822_p9, %p821_p3 }
  0x39   : > { %p824_p0 = pnand %p823_p6, %p817_p2 }
  0x3b   : > { %827 = shalt.err (!%p824_p0)
}
  0x3c   : > { %662 = dma.hbm_to_vmem [thread:$0]  (!%p1195_p10), %s194_s18, 64, %s197_s17, %s186_s23  }
  0x3d   : > { %p236_p13 = scmp.lt.s32.totalorder %s1004_s28, 5  ;;  %s203_s30 = sand.u32 1, %s972_s20  }
  0x3e   : > { %s213_s6 = sadd.s32 %s1000_s27, %s623_s15  ;;  %s601_s8 = sshll.u32 %s203_s30, 6 }
  0x3f   : > { %p1216_p7 = pnand %p605_p12, %p236_p13  ;;  %s604_s11 = sshll.u32 %s213_s6, 6 }
  0x40   : > { %s215_s13 = scalar_lea.hbm %s1359_s1, %s604_s11  ;;  %s207_s7 = scalar_lea.vmem [#allocation6], %s601_s8 }
  0x41   : > { %s216_s0 = sshll.u32 %s207_s7, 4  ;;  %s204_s26 = scalar_lea.sflag [#allocation7], %s203_s30  ;;  %s217_s0 = int_to_ptr.vmem [resolvable:$true] %s216_s0 }
  0x42   : > { %p830_p0 = pneg %p1202_p11  ;;  %s841_s17 = scalar_lea.vmem %s217_s0, 1024 }
  0x43   : > { %p842_p6 = scmp.ne.s32.totalorder %s217_s0, %s841_s17  ;;  %s1007_s15 = smov [#allocation6]  }
  0x44   : > { %s846_s23 = sshll.u32 %s1007_s15, 4  ;;  %s847_s23 = int_to_ptr.vmem [resolvable:$false] %s846_s23 }
  0x45   : > { %p844_p9 = pnand %p842_p6, %p830_p0  ;;  %s848_s18 = scalar_lea.vmem %s847_s23, 2048 }
  0x46   : > { %p849_p12 = scmp.lt.s32.totalorder %s217_s0, %s847_s23  ;;  %p850_p1 = scmp.lt.s32.totalorder %s848_s18, %s841_s17 }
  0x47   : > { %p845_p10 = pneg %p844_p9 }
  0x48   : > { %p851_p4 = por %p850_p1, %p849_p12 }
  0x4a   : > { %p852_p5 = pnand %p851_p4, %p845_p10 }
  0x4c   : > { %855 = shalt.err (!%p852_p5)
}
  0x4d   : > { %s1008_s6 = smov 128   ;;  %s1009_s8 = smov 64  }
  0x4e   : > { %s1010_s11 = smov 4   ;;  %240 = sbr.rel (%p1216_p7) target bundleno = 421 (0x1a5), region = 36 }
  0x4f   : > { %665 = dma.hbm_to_vmem [thread:$0]  (!%p1202_p11), %s215_s13, 1024, %s217_s0, %s204_s26, %s1008_s6, %s1009_s8, %s1010_s11  }
  0x50   : > { %s242_s30 = sand.u32 (!%p1216_p7), 1, %s980_s22  }
  0x51   : > { %s1230_s5 = sshll.u32 (!%p1216_p7), %s242_s30, 2  ;;  %s243_s9 = scalar_lea.sflag (!%p1216_p7), [#allocation4], %s242_s30 }
  0x52   : > { %s246_s7 = scalar_lea.vmem (!%p1216_p7), [#allocation3], %s1230_s5 }
  0x53   : > { %939 = dma.done.wait (%p1141_p8), %s243_s9, 64  }
  0x54   : > { %941 = vsyncadd (%p1141_p8), %s243_s9, 4294967232  ;;  %s251_s10 = sand.u32 1, %s968_s19   ;;  %p1397_p11 = scmp.ne.s32.totalorder %s1386_s29, 0 }
  0x55   : > { %s607_s0 = sshll.u32 %s251_s10, 6  ;;  %s252_s26 = scalar_lea.sflag [#allocation7], %s251_s10 }
  0x56   : > { %s1238_s14 = scalar_lea.vmem [#allocation6], %s607_s0 }
  0x57   : > { %943 = dma.done.wait (%p1397_p11), %s252_s26, 1024  }
  0x58   : > { %945 = vsyncadd (%p1397_p11), %s252_s26, 4294966272  ;;  %s288_s13 = sand.u32 1, %s956_s16   ;;  %p292_p2 = scmp.lt.s32.totalorder %s992_s25, 1 }
  0x59   : > { %s1248_s12 = sshll.u32 %s288_s13, 2  ;;  %p609_p8 = scmp.ne.s32.totalorder %s988_s24, 0 }
  0x5a   : > { %s1251_s17 = scalar_select %p292_p2, %s992_s25, 1 }
  0x5b   : > { %s290_s11 = scalar_lea.vmem [#allocation8], %s1248_s12  ;;  %302 = sbr.rel (%p609_p8) target bundleno = 98 (0x62), region = 48 }
  0x5c   : > { %s294_s18 = scalar_lea.vmem %s1360_s2, %s1251_s17  ;;  %s297_s8 = scalar_lea.vmem %s1361_s3, %s1251_s17 }
  0x60   : > { %v1011_v0 = vmov 0.0  }
  0x61   : > { %303 = vst [vmem:[#allocation2] sm:$0xff] %v1011_v0 }
  0x62 PF: > { %v790_v1 = vld [vmem:[%s1238_s14 + $0x38] sm:$0xff]   ;;  %v1012_v2 = vmov 0.0   ;;  %v791_v3 = vld [vmem:[%s1238_s14 + $0x30] sm:$0xff]   ;;  %vm1013_vm0 = vmmov 0   ;;  %v792_v4 = vld [vmem:[%s1238_s14 + $0x28] sm:$0xff]   ;;  %p618_p3 = scmp.ne.s32.totalorder %s988_s24, 1 }
  0x63   : > { %633 = vmatprep.subr.bf16.mxu0 %v1012_v2  ;;  %649 = vmatprep.mubr.msk.bf16.mxu0 %vm1013_vm0, %v1012_v2  ;;  %v793_v5 = vld [vmem:[%s1238_s14 + $0x20] sm:$0xff]   ;;  %v794_v6 = vld [vmem:[%s1238_s14 + $0x18] sm:$0xff]   ;;  %v795_v7 = vld [vmem:[%s1238_s14 + $0x10] sm:$0xff]  }
  0x64   : > { %634 = vmatpush3.bf16.msra.mxu0 %v790_v1  ;;  %v796_v8 = vld [vmem:[%s1238_s14 + $0x8] sm:$0xff]   ;;  %v797_v9 = vld [vmem:[%s1238_s14] sm:$0xff]   ;;  %v305_v10 = vld [vmem:[%s246_s7] sm:$0xf] }
  0x65   : > { %635 = vmatprep.subr.bf16.mxu0 %v1012_v2 }
  0x68   : > { %636 = vmatpush3.bf16.msra.mxu0 %v791_v3  ;;  %v304_v11 = vld [vmem:[#allocation2] sm:$0xff] }
  0x69   : > { %637 = vmatprep.subr.bf16.mxu0 %v1012_v2 }
  0x6c   : > { %638 = vmatpush3.bf16.msra.mxu0 %v792_v4 }
  0x6d   : > { %639 = vmatprep.subr.bf16.mxu0 %v1012_v2 }
  0x70   : > { %640 = vmatpush3.bf16.msra.mxu0 %v793_v5 }
  0x71   : > { %641 = vmatprep.subr.bf16.mxu0 %v1012_v2 }
  0x74   : > { %642 = vmatpush3.bf16.msra.mxu0 %v794_v6 }
  0x75   : > { %643 = vmatprep.subr.bf16.mxu0 %v1012_v2 }
  0x78   : > { %644 = vmatpush3.bf16.msra.mxu0 %v795_v7 }
  0x79   : > { %645 = vmatprep.subr.bf16.mxu0 %v1012_v2 }
  0x7c   : > { %646 = vmatpush3.bf16.msra.mxu0 %v796_v8 }
  0x7d   : > { %647 = vmatprep.subr.bf16.mxu0 %v1012_v2 }
  0x80   : > { %648 = vmatpush3.bf16.msra.mxu0 %v797_v9 }
  0x83   : > { %650 = vmatmul.mubr.bf16.vlgmr.msra.gmra.mxu0 %v305_v10 }
 0x143   : > { %v404_v12 = vpop.f32.mrf.mxu0 }
 0x144   : > { %v410_v13 = vadd.f32 %v404_v12, %v304_v11 }
 0x145   : > { %v651_v14 = vpop.f32.mrf.mxu0  ;;  %415 = sbr.rel (%p618_p3) target bundleno = 397 (0x18d), region = 52 }
 0x146   : > { %411 = vst [vmem:[#allocation2] sm:$0xff] %v410_v13 }
 0x147   : > { %v407_v15 = vpop.f32.mrf.mxu0 }
 0x149   : > { %v652_v16 = vpop.f32.mrf.mxu0 }
 0x14a   : > { %v441_v35 = vlaneseq  ;;  %v433_v37 = vld [vmem:[%s294_s18] sm:$0x1] }
 0x14b   : > { %v437_v41 = vld [vmem:[%s297_s8] sm:$0x1] }
 0x14c   : > { %v442_v36 = vshrl.u32 %v441_v35, 7 }
 0x14d   : > { %v416_v17 = vld [vmem:[#allocation2] sm:$0xff] }
 0x14e   : > { %v417_v18 = vrot.slane %v416_v17, 4  ;;  %v443_v38 = vsub.s32 0, %v442_v36 }
 0x150   : > { %v418_v19 = vadd.f32 %v417_v18, %v416_v17 }
 0x152   : > { %v419_v20 = vrot.slane %v418_v19, 2 }
 0x154   : > { %v420_v21 = vadd.f32 %v419_v20, %v418_v19 }
 0x156   : > { %v421_v22 = vrot.slane %v420_v21, 1 }
 0x158   : > { %v422_v23 = vadd.f32 %v421_v22, %v420_v21 }
 0x15a   : > { %v423_v24 = vmul.f32 0.125, %v422_v23 }
 0x15c   : > { %v424_v25 = vsub.f32 %v416_v17, %v423_v24 }
 0x15e   : > { %v425_v26 = vmul.f32 %v424_v25, %v424_v25 }
 0x160   : > { %v426_v27 = vrot.slane %v425_v26, 4 }
 0x162   : > { %v427_v28 = vadd.f32 %v426_v27, %v425_v26 }
 0x164   : > { %v428_v29 = vrot.slane %v427_v28, 2 }
 0x166   : > { %v429_v30 = vadd.f32 %v428_v29, %v427_v28 }
 0x168   : > { %v430_v31 = vrot.slane %v429_v30, 1 }
 0x16a   : > { %v431_v32 = vadd.f32 %v430_v31, %v429_v30 }
 0x16c   : > { %v432_v33 = vmul.f32 0.125, %v431_v32 }
 0x16e   : > { %v434_v34 = vadd.f32 1e-05, %v432_v33 }
 0x170   : > { %798 = vrsqrt.f32 %v434_v34 }
 0x17d   : > { %v799_v39 = vpop.eup %798 }
 0x17e   : > { %v436_v40 = vmul.f32 %v799_v39, %v433_v37 }
 0x180   : > { %v438_v42 = vmul.f32 %v436_v40, %v423_v24  ;;  %v444_v43 = vrot.slane %v436_v40, %v443_v38 }
 0x182   : > { %v439_v44 = vsub.f32 %v437_v41, %v438_v42  ;;  %v446_v45 = vmul.f32 %v444_v43, %v416_v17 }
 0x184   : > { %v451_v46 = vrot.slane %v439_v44, %v443_v38 }
 0x186   : > { %v453_v47 = vadd.f32 %v451_v46, %v446_v45 }
 0x188   : > { %v454_v48 = vmax.f32 %v453_v47, 0.0 }
 0x18a   : > { %v455_v49 = vpack.c.bf16 %v454_v48, %v454_v48 }
 0x18c   : > { %456 = vst [vmem:[%s290_s11] sm:$0xf] %v455_v49 }
 0x18d PF: > { %s620_s7 = sshll.u32 %s992_s25, 6  ;;  %s471_s14 = sshll.u32 %s290_s11, 4  ;;  %s472_s14 = int_to_ptr.vmem [resolvable:$true] %s471_s14 }
 0x18e   : > { %s469_s26 = scalar_lea.hbm %s1362_s4, %s620_s7  ;;  %s458_s17 = scalar_lea.sflag [#allocation5], %s288_s13 }
 0x18f   : > { %s856_s15 = scalar_lea.vmem %s472_s14, 64  ;;  %p1398_p7 = scmp.ne.s32.totalorder %s1390_s21, 0 }
 0x190   : > { %p857_p13 = scmp.ne.s32.totalorder %s472_s14, %s856_s15  ;;  %s1014_s23 = smov [#allocation8]  }
 0x191   : > { %s860_s18 = sshll.u32 %s1014_s23, 4  ;;  %s861_s18 = int_to_ptr.vmem [resolvable:$false] %s860_s18 }
 0x192   : > { %p858_p0 = pnand %p857_p13, %p1398_p7  ;;  %s862_s29 = scalar_lea.vmem %s861_s18, 128 }
 0x193   : > { %p863_p9 = scmp.lt.s32.totalorder %s472_s14, %s861_s18  ;;  %p864_p10 = scmp.lt.s32.totalorder %s862_s29, %s856_s15 }
 0x194   : > { %p859_p6 = pneg %p858_p0 }
 0x195   : > { %p865_p12 = por %p864_p10, %p863_p9 }
 0x197   : > { %p866_p1 = pnand %p865_p12, %p859_p6 }
 0x199   : > { %869 = shalt.err (!%p866_p1)
}
 0x19a   : > { %s870_s25 = scalar_lea.hbm %s469_s26, 64  ;;  %s874_s6 = scalar_lea.hbm %s1362_s4, 128 }
 0x19b   : > { %p871_p4 = scmp.ne.s32.totalorder %s469_s26, %s870_s25  ;;  %p875_p2 = scmp.lt.s32.totalorder %s469_s26, %s1362_s4 }
 0x19c   : > { %p876_p8 = scmp.lt.s32.totalorder %s874_s6, %s870_s25 }
 0x19d   : > { %p872_p5 = pnand %p871_p4, %p1398_p7 }
 0x19e   : > { %p877_p3 = por %p876_p8, %p875_p2 }
 0x19f   : > { %p873_p11 = pneg %p872_p5 }
 0x1a1   : > { %p878_p13 = pnand %p877_p3, %p873_p11 }
 0x1a3   : > { %881 = shalt.err (!%p878_p13)
}
 0x1a4   : > { %657 = dma.vmem_to_hbm [thread:$0]  (%p1398_p7), %s472_s14, 64, %s469_s26, %s458_s17  }
 0x1a5 PF: > { %s1399_s24 = sld [smem:[#allocation12_spill]]  ;;  %p671_p0 = scmp.ge.s32.totalorder %s1004_s28, 2 }
 0x1a6   : > { %s1400_s30 = sld [smem:[#allocation21_spill]] }
 0x1ab   : > { %s483_s5 = sand.u32 1, %s1399_s24  }
 0x1ac   : > { %p1401_p6 = scmp.ne.s32.totalorder %s1400_s30, 0  ;;  %s484_s9 = scalar_lea.sflag [#allocation5], %s483_s5 }
 0x1ae   : > { %p667_p9 = pnand %p671_p0, %p1401_p6 }
 0x1b0   : > { %p668_p10 = pneg %p667_p9 }
 0x1b2   : > { %947 = dma.done.wait (%p668_p10), %s484_s9, 64  }
 0x1b3   : > { %949 = vsyncadd (%p668_p10), %s484_s9, 4294967232  ;;  %s23_s28 = sadd.s32 1, %s1004_s28   ;;  %s1403_s21 = sld [smem:[#allocation13_spill]] }
 0x1b4   : > { %p1311_p12 = scmp.ge.s32.totalorder %s23_s28, 6   ;;  %s1404_s17 = sld [smem:[#allocation20_spill]] }
 0x1b5   : > { %s1405_s10 = sld [smem:[#allocation19_spill]]  ;;  %s1411_s15 = smov %s956_s16 }
 0x1b6   : > { %s1406_s0 = sld [smem:[#allocation14_spill]]  ;;  %s1413_s18 = smov %s968_s19 }
 0x1b7   : > { %s1407_s23 = sld [smem:[#allocation18_spill]]  ;;  %s1414_s19 = smov %s972_s20 }
 0x1b8   : > { %s1408_s24 = sld [smem:[#allocation15_spill]]  ;;  %s1418_s25 = smov %s1000_s27 }
 0x1b9   : > { %s1409_s26 = sld [smem:[#allocation16_spill]]  ;;  %s1412_s16 = smov %s1403_s21 }
 0x1ba   : > { %s1410_s14 = sld [smem:[#allocation17_spill]]  ;;  %s1416_s21 = smov %s980_s22 }
 0x1bb   : > { %s1415_s20 = smov %s1405_s10 }
 0x1bc   : > { %s1417_s22 = smov %s1406_s0  ;;  %22 = sbr.rel (!%p1311_p12) target bundleno = 14 (0xe), region = 108 }
 0x1c0   : > { %s1419_s27 = smov %s1410_s14 }
 0x1c1   :  { %489 = vsyncpa [#allocation4], 1 }
 0x1c2   :  { %491 = vsyncpa [#allocation4 + $0x1], 1 }
 0x1c3   :  { %492 = vsyncpa [#allocation7], 1 }
 0x1c4   :  { %494 = vsyncpa [#allocation7 + $0x1], 1 }
 0x1c5   :  { %495 = vsyncpa [#allocation5], 1 }
 0x1c6   :  { %497 = vsyncpa [#allocation5 + $0x1], 1 }

</bundles_post_ra>
